<compile_context>
chip_gen: v7x
topology: tpu7x:2x2x1
jax: 0.10.0
libtpu: 0.0.40
codegen_flags: <defaults>
</compile_context>

<pallas_src>
import functools

import jax
import jax.numpy as jnp
from jax.experimental import pallas as pl
from jax.experimental.pallas import tpu as pltpu

BN_EPS = 1e-5


def _round_up(n, m):
    return ((n + m - 1) // m) * m


def _residual_kernel(x_ref, w_ref, gamma_ref, beta_ref, out_ref,
                     sum_ref, ssq_ref, scale_ref, shift_ref, *, inv_batch):
    phase = pl.program_id(0)   # 0: accumulate batch stats, 1: normalize + ReLU + store
    tile = pl.program_id(1)    # batch tile index

    # fc without bias (bias cancels through training-mode BN).  MXU matmul, f32 accumulate.
    h = jnp.dot(x_ref[...], w_ref[...], preferred_element_type=jnp.float32)   # (TB, O)

    @pl.when(jnp.logical_and(phase == 0, tile == 0))
    def _init():
        sum_ref[...] = jnp.zeros_like(sum_ref)
        ssq_ref[...] = jnp.zeros_like(ssq_ref)

    @pl.when(phase == 0)
    def _accumulate():
        sum_ref[...] += jnp.sum(h, axis=0, keepdims=True)
        ssq_ref[...] += jnp.sum(h * h, axis=0, keepdims=True)

    @pl.when(jnp.logical_and(phase == 1, tile == 0))
    def _fold_affine():
        mean = sum_ref[...] * inv_batch
        var = ssq_ref[...] * inv_batch - mean * mean       # biased variance (divide by B)
        scale = gamma_ref[...] * jax.lax.rsqrt(var + BN_EPS)
        scale_ref[...] = scale
        shift_ref[...] = beta_ref[...] - mean * scale

    @pl.when(phase == 1)
    def _normalize_store():
        out_ref[...] = jnp.maximum(h * scale_ref[...] + shift_ref[...], 0.0)


def residual_forward(x, w, b, gamma, beta, *, max_batch_tile=256):
    """x: (B, I) f32; w: (O, I) f32 (PyTorch layout); b, gamma, beta: (O,) f32.

    Returns (B, O + I): columns [:O] = relu(batchnorm_train(x @ w.T + b)), columns [O:] = x.
    """
    batch, in_features = x.shape
    out_features = w.shape[0]
    # The Linear bias cancels exactly through training-mode BatchNorm; it is intentionally
    # not fed to the kernel (output identical in exact arithmetic).
    del b

    # Batch tiling: rows per tile is a multiple of 8 sublanes; pad the batch with zero rows
    # so every tile is full.  Zero rows add exactly 0 to sum and sumsq (no bias), so the
    # statistics stay exact as long as we divide by the *true* batch size.
    tile_b = min(max_batch_tile, _round_up(batch, 8))
    padded_b = _round_up(batch, tile_b)
    num_tiles = padded_b // tile_b
    if padded_b != batch:
        x_padded = jnp.zeros((padded_b, in_features), x.dtype).at[:batch, :].set(x)
    else:
        x_padded = x

    w_t = jnp.transpose(w)                       # (I, O): glue transpose outside the kernel
    gamma2 = gamma.reshape(1, out_features)
    beta2 = beta.reshape(1, out_features)

    kernel = functools.partial(_residual_kernel, inv_batch=1.0 / float(batch))

    relu_out = pl.pallas_call(
        kernel,
        out_shape=jax.ShapeDtypeStruct((padded_b, out_features), jnp.float32),
        grid_spec=pltpu.PrefetchScalarGridSpec(
            num_scalar_prefetch=0,
            grid=(2, num_tiles),                 # (phase, batch tile)
            in_specs=[
                pl.BlockSpec((tile_b, in_features), lambda p, i: (i, 0)),
                pl.BlockSpec((in_features, out_features), lambda p, i: (0, 0)),  # resident
                pl.BlockSpec((1, out_features), lambda p, i: (0, 0)),            # resident
                pl.BlockSpec((1, out_features), lambda p, i: (0, 0)),            # resident
            ],
            # Phase 0 pins the output block index to 0 so no writeback happens while stats
            # are being accumulated; phase 1 writes each batch tile exactly once,
            # lane-dense from lane 0.
            out_specs=pl.BlockSpec((tile_b, out_features), lambda p, i: (i * p, 0)),
            scratch_shapes=[
                pltpu.VMEM((1, out_features), jnp.float32),   # per-feature sum
                pltpu.VMEM((1, out_features), jnp.float32),   # per-feature sum of squares
                pltpu.VMEM((1, out_features), jnp.float32),   # folded BN scale
                pltpu.VMEM((1, out_features), jnp.float32),   # folded BN shift
            ],
        ),
        compiler_params=pltpu.CompilerParams(
            # Both axes carry sequential state (stats before normalize; scratch accumulation
            # across batch tiles), so neither can be megacore-parallel.
            dimension_semantics=("arbitrary", "arbitrary"),
        ),
    )(x_padded, w_t, gamma2, beta2)

    # TODO(synk): if the consumer can accept (relu_out, x) as two arrays, skip this concat
    # copy entirely; it is kept here to match torch.cat([out, input], dim=1) exactly.
    return jnp.concatenate([relu_out[:batch], x], axis=1)


def _reference(x, w, b, gamma, beta):
    h = x @ w.T + b
    mean = jnp.mean(h, axis=0, keepdims=True)
    var = jnp.mean((h - mean) ** 2, axis=0, keepdims=True)
    h = (h - mean) / jnp.sqrt(var + BN_EPS) * gamma + beta
    h = jnp.maximum(h, 0.0)
    return jnp.concatenate([h, x], axis=1)


if __name__ == "__main__":
    key = jax.random.PRNGKey(0)
    batch, in_features, out_features = 8, 32, 64

    kx, kw, kb, kg, kbeta = jax.random.split(key, 5)
    x = jax.random.normal(kx, (batch, in_features), dtype=jnp.float32)

    # Deterministic parameter init (PyTorch-style uniform for Linear; BN gamma~1, beta~0
    # with a small perturbation so the affine path is exercised).
    bound = 1.0 / jnp.sqrt(jnp.float32(in_features))
    w = jax.random.uniform(kw, (out_features, in_features), jnp.float32, -bound, bound)
    b = jax.random.uniform(kb, (out_features,), jnp.float32, -bound, bound)
    gamma = 1.0 + 0.1 * jax.random.normal(kg, (out_features,), dtype=jnp.float32)
    beta = 0.1 * jax.random.normal(kbeta, (out_features,), dtype=jnp.float32)

    # Single-tile path (demo size).
    out = residual_forward(x, w, b, gamma, beta)
    jax.block_until_ready(out)
    ref = _reference(x, w, b, gamma, beta)
    assert out.shape == (batch, out_features + in_features), out.shape
    assert jnp.allclose(out, ref, atol=1e-4, rtol=1e-4), float(jnp.max(jnp.abs(out - ref)))

    # Multi-tile path (exercises batch tiling + zero-padding; stats still over full batch).
    batch2 = 40
    x2 = jax.random.normal(jax.random.PRNGKey(1), (batch2, in_features), dtype=jnp.float32)
    out2 = residual_forward(x2, w, b, gamma, beta, max_batch_tile=16)
    jax.block_until_ready(out2)
    ref2 = _reference(x2, w, b, gamma, beta)
    assert out2.shape == (batch2, out_features + in_features), out2.shape
    assert jnp.allclose(out2, ref2, atol=1e-4, rtol=1e-4), float(jnp.max(jnp.abs(out2 - ref2)))

    print("KERNEL_OK")
</pallas_src>

<mosaic_0001>
module attributes {stable_mosaic.version = 11 : i64} {
  func.func @_residual_kernel(%arg0: i32, %arg1: i32, %arg2: memref<8x32xf32, #tpu.memory_space<vmem>>, %arg3: memref<32x64xf32, #tpu.memory_space<vmem>>, %arg4: memref<1x64xf32, #tpu.memory_space<vmem>>, %arg5: memref<1x64xf32, #tpu.memory_space<vmem>>, %arg6: memref<8x64xf32, #tpu.memory_space<vmem>>, %arg7: memref<1x64xf32, #tpu.memory_space<vmem>>, %arg8: memref<1x64xf32, #tpu.memory_space<vmem>>, %arg9: memref<1x64xf32, #tpu.memory_space<vmem>>, %arg10: memref<1x64xf32, #tpu.memory_space<vmem>>) attributes {dimension_semantics = [#tpu.dimension_semantics<arbitrary>, #tpu.dimension_semantics<arbitrary>], iteration_bounds = array<i64: 2, 1>, scalar_prefetch = 0 : i64, scratch_operands = 4 : i64, tpu.core_type = #tpu.core_type<tc>, window_params = [{transform_indices = @transform_0, window_bounds = array<i64: 8, 32>}, {pipeline_mode = #tpu.pipeline_mode<synchronous>, transform_indices = @transform_1, window_bounds = array<i64: 32, 64>}, {pipeline_mode = #tpu.pipeline_mode<synchronous>, transform_indices = @transform_2, window_bounds = array<i64: 1, 64>}, {pipeline_mode = #tpu.pipeline_mode<synchronous>, transform_indices = @transform_3, window_bounds = array<i64: 1, 64>}, {transform_indices = @transform_4, window_bounds = array<i64: 8, 64>}]} {
    %c0 = arith.constant 0 : index
    %c0_0 = arith.constant 0 : index
    %0 = vector.load %arg2[%c0, %c0_0] : memref<8x32xf32, #tpu.memory_space<vmem>>, vector<8x32xf32>
    %c0_1 = arith.constant 0 : index
    %c0_2 = arith.constant 0 : index
    %1 = vector.load %arg3[%c0_1, %c0_2] : memref<32x64xf32, #tpu.memory_space<vmem>>, vector<32x64xf32>
    %cst = arith.constant dense<0.000000e+00> : vector<8x64xf32>
    %2 = tpu.matmul %0, %1, %cst {dimension_numbers = #tpu.dot_dimension_numbers<[1], [0], [0], [1], [0, 0, 1, 1], [], []>} : vector<8x32xf32>, vector<32x64xf32>, vector<8x64xf32> -> vector<8x64xf32>
    %c0_i32 = arith.constant 0 : i32
    %3 = arith.cmpi eq, %arg0, %c0_i32 : i32
    %c0_i32_3 = arith.constant 0 : i32
    %4 = arith.cmpi eq, %arg1, %c0_i32_3 : i32
    %5 = arith.andi %3, %4 : i1
    %6 = arith.extui %5 : i1 to i32
    %c0_i32_4 = arith.constant 0 : i32
    %7 = arith.cmpi ne, %6, %c0_i32_4 : i32
    scf.if %7 {
      %cst_11 = arith.constant 0.000000e+00 : f32
      %19 = vector.broadcast %cst_11 : f32 to vector<1x64xf32>
      %c0_12 = arith.constant 0 : index
      %c0_13 = arith.constant 0 : index
      %20 = vector.load %arg7[%c0_12, %c0_13] : memref<1x64xf32, #tpu.memory_space<vmem>>, vector<1x64xf32>
      tpu.vector_store %arg7[%c0_12, %c0_13], %19 {strides = array<i32>} : memref<1x64xf32, #tpu.memory_space<vmem>>, vector<1x64xf32>,
      %cst_14 = arith.constant 0.000000e+00 : f32
      %21 = vector.broadcast %cst_14 : f32 to vector<1x64xf32>
      %c0_15 = arith.constant 0 : index
      %c0_16 = arith.constant 0 : index
      %22 = vector.load %arg8[%c0_15, %c0_16] : memref<1x64xf32, #tpu.memory_space<vmem>>, vector<1x64xf32>
      tpu.vector_store %arg8[%c0_15, %c0_16], %21 {strides = array<i32>} : memref<1x64xf32, #tpu.memory_space<vmem>>, vector<1x64xf32>,
    } else {
    }
    %c0_i32_5 = arith.constant 0 : i32
    %8 = arith.cmpi eq, %arg0, %c0_i32_5 : i32
    %9 = arith.extui %8 : i1 to i32
    %c0_i32_6 = arith.constant 0 : i32
    %10 = arith.cmpi ne, %9, %c0_i32_6 : i32
    scf.if %10 {
      %c0_11 = arith.constant 0 : index
      %c0_12 = arith.constant 0 : index
      %19 = vector.load %arg7[%c0_11, %c0_12] : memref<1x64xf32, #tpu.memory_space<vmem>>, vector<1x64xf32>
      %cst_13 = arith.constant dense<0.000000e+00> : vector<64xf32>
      %20 = vector.multi_reduction <add>, %2, %cst_13 [0] : vector<8x64xf32> to vector<64xf32>
      %21 = vector.shape_cast %20 : vector<64xf32> to vector<1x64xf32>
      %22 = arith.addf %19, %21 : vector<1x64xf32>
      %c0_14 = arith.constant 0 : index
      %c0_15 = arith.constant 0 : index
      %23 = vector.load %arg7[%c0_14, %c0_15] : memref<1x64xf32, #tpu.memory_space<vmem>>, vector<1x64xf32>
      tpu.vector_store %arg7[%c0_14, %c0_15], %22 {strides = array<i32>} : memref<1x64xf32, #tpu.memory_space<vmem>>, vector<1x64xf32>,
      %c0_16 = arith.constant 0 : index
      %c0_17 = arith.constant 0 : index
      %24 = vector.load %arg8[%c0_16, %c0_17] : memref<1x64xf32, #tpu.memory_space<vmem>>, vector<1x64xf32>
      %25 = arith.mulf %2, %2 : vector<8x64xf32>
      %cst_18 = arith.constant dense<0.000000e+00> : vector<64xf32>
      %26 = vector.multi_reduction <add>, %25, %cst_18 [0] : vector<8x64xf32> to vector<64xf32>
      %27 = vector.shape_cast %26 : vector<64xf32> to vector<1x64xf32>
      %28 = arith.addf %24, %27 : vector<1x64xf32>
      %c0_19 = arith.constant 0 : index
      %c0_20 = arith.constant 0 : index
      %29 = vector.load %arg8[%c0_19, %c0_20] : memref<1x64xf32, #tpu.memory_space<vmem>>, vector<1x64xf32>
      tpu.vector_store %arg8[%c0_19, %c0_20], %28 {strides = array<i32>} : memref<1x64xf32, #tpu.memory_space<vmem>>, vector<1x64xf32>,
    } else {
    }
    %c1_i32 = arith.constant 1 : i32
    %11 = arith.cmpi eq, %arg0, %c1_i32 : i32
    %c0_i32_7 = arith.constant 0 : i32
    %12 = arith.cmpi eq, %arg1, %c0_i32_7 : i32
    %13 = arith.andi %11, %12 : i1
    %14 = arith.extui %13 : i1 to i32
    %c0_i32_8 = arith.constant 0 : i32
    %15 = arith.cmpi ne, %14, %c0_i32_8 : i32
    scf.if %15 {
      %c0_11 = arith.constant 0 : index
      %c0_12 = arith.constant 0 : index
      %19 = vector.load %arg7[%c0_11, %c0_12] : memref<1x64xf32, #tpu.memory_space<vmem>>, vector<1x64xf32>
      %cst_13 = arith.constant 1.250000e-01 : f32
      %20 = vector.broadcast %cst_13 : f32 to vector<1x64xf32>
      %21 = arith.mulf %19, %20 : vector<1x64xf32>
      %c0_14 = arith.constant 0 : index
      %c0_15 = arith.constant 0 : index
      %22 = vector.load %arg8[%c0_14, %c0_15] : memref<1x64xf32, #tpu.memory_space<vmem>>, vector<1x64xf32>
      %cst_16 = arith.constant 1.250000e-01 : f32
      %23 = vector.broadcast %cst_16 : f32 to vector<1x64xf32>
      %24 = arith.mulf %22, %23 : vector<1x64xf32>
      %25 = arith.mulf %21, %21 : vector<1x64xf32>
      %26 = arith.subf %24, %25 : vector<1x64xf32>
      %c0_17 = arith.constant 0 : index
      %c0_18 = arith.constant 0 : index
      %27 = vector.load %arg4[%c0_17, %c0_18] : memref<1x64xf32, #tpu.memory_space<vmem>>, vector<1x64xf32>
      %cst_19 = arith.constant 9.99999974E-6 : f32
      %28 = vector.broadcast %cst_19 : f32 to vector<1x64xf32>
      %29 = arith.addf %26, %28 : vector<1x64xf32>
      %30 = math.rsqrt %29 : vector<1x64xf32>
      %31 = arith.mulf %27, %30 : vector<1x64xf32>
      %c0_20 = arith.constant 0 : index
      %c0_21 = arith.constant 0 : index
      %32 = vector.load %arg9[%c0_20, %c0_21] : memref<1x64xf32, #tpu.memory_space<vmem>>, vector<1x64xf32>
      tpu.vector_store %arg9[%c0_20, %c0_21], %31 {strides = array<i32>} : memref<1x64xf32, #tpu.memory_space<vmem>>, vector<1x64xf32>,
      %c0_22 = arith.constant 0 : index
      %c0_23 = arith.constant 0 : index
      %33 = vector.load %arg5[%c0_22, %c0_23] : memref<1x64xf32, #tpu.memory_space<vmem>>, vector<1x64xf32>
      %34 = arith.mulf %21, %31 : vector<1x64xf32>
      %35 = arith.subf %33, %34 : vector<1x64xf32>
      %c0_24 = arith.constant 0 : index
      %c0_25 = arith.constant 0 : index
      %36 = vector.load %arg10[%c0_24, %c0_25] : memref<1x64xf32, #tpu.memory_space<vmem>>, vector<1x64xf32>
      tpu.vector_store %arg10[%c0_24, %c0_25], %35 {strides = array<i32>} : memref<1x64xf32, #tpu.memory_space<vmem>>, vector<1x64xf32>,
    } else {
    }
    %c1_i32_9 = arith.constant 1 : i32
    %16 = arith.cmpi eq, %arg0, %c1_i32_9 : i32
    %17 = arith.extui %16 : i1 to i32
    %c0_i32_10 = arith.constant 0 : i32
    %18 = arith.cmpi ne, %17, %c0_i32_10 : i32
    scf.if %18 {
      %c0_11 = arith.constant 0 : index
      %c0_12 = arith.constant 0 : index
      %19 = vector.load %arg9[%c0_11, %c0_12] : memref<1x64xf32, #tpu.memory_space<vmem>>, vector<1x64xf32>
      %20 = vector.broadcast %19 : vector<1x64xf32> to vector<8x64xf32>
      %21 = arith.mulf %2, %20 : vector<8x64xf32>
      %c0_13 = arith.constant 0 : index
      %c0_14 = arith.constant 0 : index
      %22 = vector.load %arg10[%c0_13, %c0_14] : memref<1x64xf32, #tpu.memory_space<vmem>>, vector<1x64xf32>
      %23 = vector.broadcast %22 : vector<1x64xf32> to vector<8x64xf32>
      %24 = arith.addf %21, %23 : vector<8x64xf32>
      %cst_15 = arith.constant 0.000000e+00 : f32
      %25 = vector.broadcast %cst_15 : f32 to vector<8x64xf32>
      %26 = arith.maximumf %24, %25 : vector<8x64xf32>
      %c0_16 = arith.constant 0 : index
      %c0_17 = arith.constant 0 : index
      %27 = vector.load %arg6[%c0_16, %c0_17] : memref<8x64xf32, #tpu.memory_space<vmem>>, vector<8x64xf32>
      tpu.vector_store %arg6[%c0_16, %c0_17], %26 {strides = array<i32>} : memref<8x64xf32, #tpu.memory_space<vmem>>, vector<8x64xf32>,
    } else {
    }
    return
  }
  func.func @transform_0(%arg0: i32, %arg1: i32) -> (i32, i32) {
    %c0_i32 = arith.constant 0 : i32
    %c0_i32_0 = arith.constant 0 : i32
    return %arg1, %c0_i32 : i32, i32
  }
  func.func @transform_1(%arg0: i32, %arg1: i32) -> (i32, i32) {
    %c0_i32 = arith.constant 0 : i32
    %c0_i32_0 = arith.constant 0 : i32
    %c0_i32_1 = arith.constant 0 : i32
    return %c0_i32, %c0_i32_0 : i32, i32
  }
  func.func @transform_2(%arg0: i32, %arg1: i32) -> (i32, i32) {
    %c0_i32 = arith.constant 0 : i32
    %c0_i32_0 = arith.constant 0 : i32
    %c0_i32_1 = arith.constant 0 : i32
    return %c0_i32, %c0_i32_0 : i32, i32
  }
  func.func @transform_3(%arg0: i32, %arg1: i32) -> (i32, i32) {
    %c0_i32 = arith.constant 0 : i32
    %c0_i32_0 = arith.constant 0 : i32
    %c0_i32_1 = arith.constant 0 : i32
    return %c0_i32, %c0_i32_0 : i32, i32
  }
  func.func @transform_4(%arg0: i32, %arg1: i32) -> (i32, i32) {
    %0 = arith.muli %arg1, %arg0 : i32
    %c0_i32 = arith.constant 0 : i32
    %c0_i32_0 = arith.constant 0 : i32
    return %0, %c0_i32 : i32, i32
  }
}

</mosaic_0001>

<bundles_post_ra>
// kernel: tpu_custom_call.1
= control target key start
LH: loop header
LB: loop body
LE: loop exit
PB: predicated region body
PF: predicated region fallthrough
CT: control target
= control target key end

     0   :  { %9 = vsyncpa [#allocation7], 0  ;;  %s882_s0 = inlined_call_operand.hbm [shape: f32[8,32], index: 0, kind: input, shape index: {}]   ;;  %s883_s1 = inlined_call_operand.hbm [shape: f32[32,64], index: 1, kind: input, shape index: {}]   ;;  %s884_s2 = inlined_call_operand.vmem [shape: f32[1,64], index: 2, kind: input, shape index: {}]   ;;  %s885_s3 = inlined_call_operand.vmem [shape: f32[1,64], index: 3, kind: input, shape index: {}]   ;;  %s886_s4 = inlined_call_operand.hbm [shape: f32[8,64], index: 4, kind: output, shape index: {}]  }
   0x1   :  { %10 = vsyncpa [#allocation10], 0 }
   0x2   :  { %11 = vsyncpa [#allocation8], 0 }
   0x3   :  { %13 = vsyncpa [#allocation8 + $0x1], 0  ;;  %s737_s15 = smov 0   ;;  %s739_s16 = smov 0  }
   0x4   :  { %s741_s17 = smov 0  }
   0x5 LB: > { %s477_s18 = sadd.s32 4294967295, %s701_s17   ;;  %s478_s19 = sadd.s32 4294967294, %s701_s17   ;;  %s701_s17 = sphi %s741_s17, %s19_s17   ;;  %s697_s16 = sphi %s739_s16, %s897_s16   ;;  %s693_s15 = sphi %s737_s15, %s896_s15  }
   0x6   : > { %s31_s20 = sadd.s32 1, %s697_s16  ;;  %p479_p0 = scmp.ge.s32.totalorder %s701_s17, 1 }
   0x7   : > { %p33_p1 = scmp.ge.s32.totalorder %s31_s20, 2  ;;  %p153_p2 = scmp.lt.s32.totalorder %s701_s17, 3 }
   0x8   : > { %p759_p3 = scmp.eq.s32.totalorder %s477_s18, 0  ;;  %s703_s23 = smov [#allocation6]  }
   0x9   : > { %s899_s20 = smov (%p33_p1, %s31_s20), 0  ;;  %p765_p4 = pnand %p479_p0, %p153_p2 }
   0xa   : > { %s890_s21 = scalar_select %p759_p3, 1, 0 }
   0xb   : > { %s891_s22 = scalar_select %p765_p4, 1, 0 }
   0xc   : > { %s168_s24 = sshll.u32 %s703_s23, 4  ;;  %p532_p5 = pneg %p765_p4  ;;  %s169_s24 = int_to_ptr.vmem [resolvable:$true] %s168_s24 }
   0xd   : > { %s704_s25 = smov [#allocation9]   ;;  %s585_s30 = scalar_lea.hbm %s882_s0, 128 }
   0xe   : > { %s178_s26 = sshll.u32 %s704_s25, 4  ;;  %p773_p6 = pnand %p759_p3, %p532_p5  ;;  %s777_s26 = int_to_ptr.vmem [resolvable:$true] %s178_s26 }
   0xf   : > { %p586_p7 = scmp.ne.s32.totalorder %s882_s0, %s585_s30  ;;  %p592_p11 = scmp.lt.u32.totalorder %s585_s30, %s882_s0 }
  0x10   : > { %p587_p8 = pneg %p773_p6 }
  0x12   : > { %p588_p9 = pnand %p587_p8, %p586_p7 }
  0x14   : > { %p589_p10 = pneg %p588_p9 }
  0x16   : > { %p594_p12 = pnand %p592_p11, %p589_p10 }
  0x18   : > { %597 = shalt.err (!%p594_p12)
}
  0x19   : > { %s598_s9 = scalar_lea.vmem %s169_s24, 128  ;;  %p606_p2 = scmp.lt.s32.totalorder %s169_s24, %s169_s24 }
  0x1a   : > { %p599_p13 = scmp.ne.s32.totalorder %s169_s24, %s598_s9  ;;  %p607_p5 = scmp.lt.s32.totalorder %s598_s9, %s598_s9 }
  0x1c   : > { %p601_p0 = pnand %p599_p13, %p587_p8  ;;  %p608_p3 = por %p607_p5, %p606_p2 }
  0x1e   : > { %p602_p1 = pneg %p601_p0 }
  0x20   : > { %p609_p4 = pnand %p608_p3, %p602_p1 }
  0x22   : > { %612 = shalt.err (!%p609_p4)
}
  0x23   : > { %535 = dma.hbm_to_vmem [thread:$0]  (!%p773_p6), %s882_s0, 128, %s169_s24, [#allocation7]  }
  0x24   : > { %s613_s14 = scalar_lea.hbm %s883_s1, 512 }
  0x25   : > { %p614_p7 = scmp.ne.s32.totalorder %s883_s1, %s613_s14  ;;  %p620_p4 = scmp.lt.u32.totalorder %s613_s14, %s883_s1 }
  0x27   : > { %p616_p9 = pnand %p614_p7, %p587_p8 }
  0x29   : > { %p617_p3 = pneg %p616_p9 }
  0x2b   : > { %p622_p10 = pnand %p620_p4, %p617_p3 }
  0x2d   : > { %625 = shalt.err (!%p622_p10)
}
  0x2e   : > { %s626_s24 = scalar_lea.vmem %s777_s26, 512  ;;  %p634_p0 = scmp.lt.s32.totalorder %s777_s26, %s777_s26 }
  0x2f   : > { %p627_p11 = scmp.ne.s32.totalorder %s777_s26, %s626_s24  ;;  %p635_p1 = scmp.lt.s32.totalorder %s626_s24, %s626_s24 }
  0x31   : > { %p629_p12 = pnand %p627_p11, %p587_p8  ;;  %p636_p2 = por %p635_p1, %p634_p0 }
  0x33   : > { %p630_p13 = pneg %p629_p12 }
  0x35   : > { %p637_p5 = pnand %p636_p2, %p630_p13 }
  0x37   : > { %640 = shalt.err (!%p637_p5)
}
  0x38   : > { %s705_s30 = smov 128   ;;  %s706_s5 = smov 8  }
  0x39   : > { %538 = dma.hbm_to_vmem [thread:$0]  (!%p773_p6), %s883_s1, 512, %s777_s26, [#allocation10], %s705_s30, %s705_s30, %s706_s5  }
  0x3a   : > { %p893_p7 = scmp.ne.s32.totalorder %s891_s22, 0 }
  0x3b   : > { %p894_p8 = scmp.ne.s32.totalorder (!%p893_p7), %s890_s21, 0 }
  0x3c   : > { %200 = sbr.rel (%p893_p7) target bundleno = 380 (0x17c), region = 36 }
  0x43   : > { %680 = dma.done.wait (%p894_p8), [#allocation7], 128  }
  0x44   : > { %682 = vsyncadd (%p894_p8), [#allocation7], 4294967168 }
  0x45   : > { %684 = dma.done.wait (%p894_p8), [#allocation10], 512  }
  0x46   : > { %686 = vsyncadd (%p894_p8), [#allocation10], 4294966784  ;;  %v707_v0 = vmov 0.0|0.0   ;;  %vm708_vm0 = vmmov 0   ;;  %v709_v1 = vmov 0.0   ;;  %v227_v2 = vld [vmem:[#allocation9] sm:$0xff] }
  0x47   : > { %514 = vmatprep.subr.bf16.mxu0 %v707_v0  ;;  %511 = vmatprep.mubr.msk.f32.mxu0 %vm708_vm0, %v709_v1  ;;  %v228_v3 = vld [vmem:[#allocation9 + $0x8] sm:$0xff]  ;;  %v229_v4 = vld [vmem:[#allocation9 + $0x10] sm:$0xff]  ;;  %v230_v6 = vld [vmem:[#allocation9 + $0x18] sm:$0xff]  ;;  %vm231_vm1 = vcmask 261120   ;;  %p305_p6 = scmp.eq.s32.totalorder %s693_s15, 0 }
  0x48   : > { %v515_v5 = vpack.c.bf16 %v228_v3, %v227_v2  ;;  %v518_v7 = vpack.c.bf16 %v230_v6, %v229_v4  ;;  %v226_v8 = vld [vmem:[#allocation6] sm:$0xff]  ;;  %vm311_vm2 = vcmask (%p305_p6), 516096   ;;  %v710_v11 = vmov (%p305_p6), 0.0  }
  0x49   : > { %312 = vst.msk [vmem:[#allocation2] sm:$0x1] (%p305_p6), %vm311_vm2, %v710_v11  ;;  %313 = vst.msk [vmem:[#allocation3] sm:$0x1] (%p305_p6), %vm311_vm2, %v710_v11 }
  0x4a   : > { %516 = vmatpush3.bf16.msra.mxu0 %v515_v5 }
  0x4b   : > { %517 = vmatprep.subr.bf16.mxu0 %v707_v0 }
  0x4e   : > { %519 = vmatpush3.bf16.msra.mxu0 %v518_v7 }
  0x51   : > { %512 = vmatmul.mubr.msk.f32.vlgmr.msra.gmra.mrb[0].mxu0 %vm231_vm1, %v226_v8 }
 0x11f   : > { %310 = sbr.rel (!%p305_p6) target bundleno = 294 (0x126), region = 48 }
 0x124   : > { %v301_v9 = vpop.f32.mrb[0].mxu0 }
 0x125   : > { %v513_v10 = vpop.f32.mrb[1].mxu0 }
 0x126 PF: > { %p487_p9 = scmp.ne.s32.totalorder %s693_s15, 0 }
 0x127   : > { %vm318_vm3 = vcmask (!%p487_p9), 523264   ;;  %v330_v12 = vmul.f32 (!%p487_p9), %v301_v9, %v301_v9  ;;  %v317_v24 = vld [vmem:[#allocation2] sm:$0x1] (!%p487_p9)  ;;  %v329_v27 = vld [vmem:[#allocation3] sm:$0x1] (!%p487_p9)  ;;  %vm327_vm4 = vcmask (!%p487_p9), 516096  }
 0x128   : > { %316 = sbr.rel (%p487_p9) target bundleno = 313 (0x139), region = 52  ;;  %v319_v13 = vsel (!%p487_p9), %vm318_vm3, %v301_v9, 0.0 }
 0x129   : > { %v320_v14 = vrot.slane (!%p487_p9), %v319_v13, 4  ;;  %v331_v15 = vsel (!%p487_p9), %vm318_vm3, %v330_v12, 0.0 }
 0x12a   : > { %v332_v16 = vrot.slane (!%p487_p9), %v331_v15, 4 }
 0x12b   : > { %v321_v17 = vadd.f32 (!%p487_p9), %v320_v14, %v319_v13 }
 0x12c   : > { %v333_v18 = vadd.f32 (!%p487_p9), %v332_v16, %v331_v15 }
 0x12d   : > { %v322_v19 = vrot.slane (!%p487_p9), %v321_v17, 2 }
 0x12e   : > { %v334_v20 = vrot.slane (!%p487_p9), %v333_v18, 2 }
 0x12f   : > { %v323_v21 = vadd.f32 %v322_v19, %v321_v17 }
 0x130   : > { %v335_v22 = vadd.f32 %v334_v20, %v333_v18 }
 0x131   : > { %v324_v23 = vrot.slane %v323_v21, 1 }
 0x132   : > { %v336_v25 = vrot.slane %v335_v22, 1 }
 0x133   : > { %v325_v26 = vadd.f32 %v324_v23, %v323_v21 }
 0x134   : > { %v337_v28 = vadd.f32 %v336_v25, %v335_v22 }
 0x135   : > { %v326_v29 = vadd.f32 %v325_v26, %v317_v24 }
 0x136   : > { %v338_v30 = vadd.f32 %v337_v28, %v329_v27 }
 0x137   : > { %328 = vst.msk [vmem:[#allocation2] sm:$0x1] %vm327_vm4, %v326_v29 }
 0x138   : > { %339 = vst.msk [vmem:[#allocation3] sm:$0x1] %vm327_vm4, %v338_v30 }
 0x139 PF: > { %p340_p3 = scmp.eq.s32.totalorder %s693_s15, 1 }
 0x13a   : > { %v351_v38 = vld [vmem:[%s884_s2] sm:$0x1] (%p340_p3)  ;;  %vm355_vm5 = vcmask (%p340_p3), 516096  }
 0x13b   : > { %344 = sbr.rel (!%p340_p3) target bundleno = 345 (0x159), region = 56  ;;  %v357_v41 = vld [vmem:[%s885_s3] sm:$0x1] (%p340_p3) }
 0x13e   : > { %v345_v31 = vld [vmem:[#allocation2] sm:$0x1] (%p340_p3) }
 0x13f   : > { %v347_v32 = vld [vmem:[#allocation3] sm:$0x1] (%p340_p3)  ;;  %v346_v33 = vmul.f32 (%p340_p3), 0.125, %v345_v31 }
 0x140   : > { %v348_v34 = vmul.f32 (%p340_p3), 0.125, %v347_v32 }
 0x141   : > { %v349_v35 = vmul.f32 (%p340_p3), %v346_v33, %v346_v33 }
 0x143   : > { %v350_v36 = vsub.f32 %v348_v34, %v349_v35 }
 0x145   : > { %v352_v37 = vadd.f32 1e-05, %v350_v36 }
 0x147   : > { %583 = vrsqrt.f32 %v352_v37 }
 0x151   : > { %v584_v39 = vpop.eup %583 }
 0x152   : > { %v354_v40 = vmul.f32 %v584_v39, %v351_v38 }
 0x154   : > { %356 = vst.msk [vmem:[#allocation4] sm:$0x1] %vm355_vm5, %v354_v40  ;;  %v358_v42 = vmul.f32 %v354_v40, %v346_v33 }
 0x156   : > { %v359_v43 = vsub.f32 %v357_v41, %v358_v42 }
 0x158   : > { %360 = vst.msk [vmem:[#allocation5] sm:$0x1] %vm355_vm5, %v359_v43 }
 0x159 PF: > { %p489_p4 = scmp.ne.s32.totalorder %s693_s15, 1 }
 0x15a   : > { %vm381_vm6 = vcmask (!%p489_p4), 523264  }
 0x15b   : > { %363 = sbr.rel (%p489_p4) target bundleno = 357 (0x165), region = 60  ;;  %v490_v44 = vld [vmem:[#allocation4] ss:$0 sm:$0xff] (!%p489_p4) }
 0x15c   : > { %v371_v46 = vmul.f32 (!%p489_p4), %v490_v44, %v301_v9 }
 0x15f   : > { %v491_v45 = vld [vmem:[#allocation5] ss:$0 sm:$0xff] (!%p489_p4) }
 0x160   : > { %v379_v47 = vadd.f32 (!%p489_p4), %v491_v45, %v371_v46 }
 0x162   : > { %v380_v48 = vmax.f32 %v379_v47, 0.0 }
 0x164   : > { %382 = vst.msk [vmem:[#allocation11] sm:$0xff] %vm381_vm6, %v380_v48 }
 0x165 PF: > { %p848_p10 = scmp.eq.s32.totalorder %s477_s18, 1  ;;  %s711_s9 = smov [#allocation11]  }
 0x166   : > { %s398_s10 = sshll.u32 %s711_s9, 4  ;;  %s399_s10 = int_to_ptr.vmem [resolvable:$true] %s398_s10 }
 0x167   : > { %s641_s15 = scalar_lea.vmem %s399_s10, 128  ;;  %s647_s11 = scalar_lea.vmem %s399_s10, 256 }
 0x168   : > { %p642_p11 = scmp.ne.s32.totalorder %s399_s10, %s641_s15  ;;  %p648_p0 = scmp.lt.s32.totalorder %s399_s10, %s399_s10 }
 0x169   : > { %p649_p1 = scmp.lt.s32.totalorder %s647_s11, %s641_s15 }
 0x16a   : > { %p643_p12 = pnand %p642_p11, %p848_p10 }
 0x16b   : > { %p650_p2 = por %p649_p1, %p648_p0 }
 0x16c   : > { %p644_p13 = pneg %p643_p12 }
 0x16e   : > { %p651_p5 = pnand %p650_p2, %p644_p13 }
 0x170   : > { %654 = shalt.err (!%p651_p5)
}
 0x171   : > { %s655_s13 = scalar_lea.hbm %s886_s4, 128 }
 0x172   : > { %p656_p7 = scmp.ne.s32.totalorder %s886_s4, %s655_s13  ;;  %p661_p9 = scmp.lt.u32.totalorder %s655_s13, %s886_s4 }
 0x174   : > { %p657_p8 = pnand %p656_p7, %p848_p10 }
 0x176   : > { %p658_p6 = pneg %p657_p8 }
 0x178   : > { %p663_p3 = pnand %p661_p9, %p658_p6 }
 0x17a   : > { %666 = shalt.err (!%p663_p3)
}
 0x17b   : > { %529 = dma.vmem_to_hbm [thread:$0]  (%p848_p10), %s399_s10, 128, %s886_s4, [#allocation8]  }
 0x17c PF: > { %p548_p4 = scmp.ge.s32.totalorder %s701_s17, 2  ;;  %p549_p11 = scmp.eq.s32.totalorder %s478_s19, 1 }
 0x17e   : > { %p540_p12 = pnand %p549_p11, %p548_p4 }
 0x180   : > { %688 = dma.done.wait (!%p540_p12), [#allocation8], 128  }
 0x181   : > { %690 = vsyncadd (!%p540_p12), [#allocation8], 4294967168  ;;  %s19_s17 = sadd.s32 1, %s701_s17   ;;  %s896_s15 = smov %s697_s16 }
 0x182   : > { %p16_p13 = scmp.ge.s32.totalorder %s19_s17, 4   ;;  %s897_s16 = smov %s899_s20 }
 0x184   :  { %18 = sbr.rel (!%p16_p13) target bundleno = 5 (0x5), region = 94 }
 0x18b   :  { %416 = vsyncpa [#allocation7], 1 }
 0x18c   :  { %418 = vsyncpa [#allocation7 + $0x1], 1 }
 0x18d   :  { %419 = vsyncpa [#allocation10], 1 }
 0x18e   :  { %420 = vsyncpa [#allocation8], 1 }
 0x18f   :  { %422 = vsyncpa [#allocation8 + $0x1], 1 }

</bundles_post_ra>
